<compile_context>
chip_gen: v5e
topology: v5e:2x2
jax: 0.10.0
libtpu: 0.0.40
codegen_flags: <defaults>
</compile_context>

<pallas_src>
import functools

import jax
import jax.numpy as jnp
import numpy as np
from jax.experimental import pallas as pl
from jax.experimental.pallas import tpu as pltpu


# ----------------------------------------------------------------------------------
# Fused Pallas kernel: a block of Bblk samples, each a (C, H*W) lane-dense slab.
# ----------------------------------------------------------------------------------
def _adain_fused_kernel(x_ref, m_ref, w1t_ref, b1_ref, wgb_ref, bgb_ref,
                        cw_ref, cb_ref, mask_ref, o_ref,
                        *, Bblk, C, H, W, eps, slope):
    HW = H * W
    f32 = jnp.float32

    # Static tap shifts for the 3x3 stride-1 pad-1 conv on the flat H*W lane axis:
    # rolled[p] = h[(p + dy*W + dx) mod HW]; boundary validity comes from mask_ref.
    shifts = []
    for ky in range(3):
        for kx in range(3):
            dy, dx = ky - 1, kx - 1
            shifts.append((-(dy * W + dx)) % HW)

    # Hoist all resident (constant-index-map) loads out of the per-sample loop.
    w1t = [w1t_ref[l].astype(f32) for l in range(2)]     # (Cmod, nh)
    b1s = [b1_ref[l].astype(f32) for l in range(2)]      # (1, nh)
    wgb = [wgb_ref[l].astype(f32) for l in range(2)]     # (2C, nh) fused [gamma|beta]
    bgb = [bgb_ref[l].astype(f32) for l in range(2)]     # (2C, 1)
    cw = [cw_ref[l].astype(f32) for l in range(2)]       # (C, 9C) tap-major packed
    cb = [cb_ref[l].astype(f32) for l in range(2)]       # (C, 1)
    masks = [mask_ref[t].astype(f32) for t in range(9)]  # (1, HW) each

    def mlp_gamma_beta(layer, m_col):
        # mlp_shared: relu(W1 @ m + b1) as VPU multiply + sublane reduce (degenerate
        # matvec, K=Cmod, N=1 -- keep it off the MXU).
        actv = jnp.sum(w1t[layer] * m_col, axis=0, keepdims=True)        # (1, nh)
        actv = jnp.maximum(actv + b1s[layer], 0.0)
        # fused [mlp_gamma | mlp_beta]: lane reduce -> per-channel columns.
        gb = jnp.sum(wgb[layer] * actv, axis=1, keepdims=True) + bgb[layer]  # (2C, 1)
        return gb[:C], gb[C:]                                            # gamma, beta

    def adain_leaky(h, gamma, beta):
        # InstanceNorm2d(affine=False, eps, biased var) + norm*(1+gamma)+beta, with
        # the module-level LeakyReLU(0.2) fused in (it always follows the AdaIN).
        mean = jnp.mean(h, axis=1, keepdims=True)                        # (C, 1)
        var = jnp.mean((h - mean) ** 2, axis=1, keepdims=True)           # two-pass var
        norm = (h - mean) * jax.lax.rsqrt(var + eps)
        y = norm * (1.0 + gamma) + beta
        return jnp.where(y > 0, y, slope * y)

    def conv3x3(h, conv_idx):
        # Build the 9 masked/rolled taps, stack along sublanes -> (9C, HW), then do a
        # single (C, 9C) @ (9C, HW) MXU matmul (one push/pop per conv).
        taps = []
        for t, shift in enumerate(shifts):
            tap = pltpu.roll(h, shift, axis=1) if shift else h
            taps.append(tap * masks[t])
        stacked = jnp.concatenate(taps, axis=0)                          # (9C, HW)
        out = jnp.dot(cw[conv_idx], stacked, preferred_element_type=f32)  # (C, HW)
        return out + cb[conv_idx]

    # Unrolled loop over the samples in this grid block (Bblk is static).
    for s in range(Bblk):
        h = x_ref[s].astype(f32)                                         # (C, HW)
        m_col = m_ref[s].astype(f32)                                     # (Cmod, 1)

        g1, be1 = mlp_gamma_beta(0, m_col)
        h = adain_leaky(h, g1, be1)        # adain_layer_1 + leaky_relu
        h = conv3x3(h, 0)                  # conv_1

        g2, be2 = mlp_gamma_beta(1, m_col)
        h = adain_leaky(h, g2, be2)        # adain_layer_2 + leaky_relu
        h = conv3x3(h, 1)                  # conv_2

        o_ref[s] = h.astype(o_ref.dtype)


# ----------------------------------------------------------------------------------
# Wrapper: weight / mask packing (layout plumbing only) + one pallas_call
# ----------------------------------------------------------------------------------
def adain_forward(x_nchw, modulation, params):
    """AdaIN.forward. NCHW in / NCHW out; modulation is flattened like .view(B, -1)."""
    B, C, H, W = x_nchw.shape
    HW = H * W

    mod2d = modulation.reshape(modulation.shape[0], -1)
    if mod2d.shape[0] != B:
        if mod2d.shape[0] == 1:
            mod2d = jnp.broadcast_to(mod2d, (B, mod2d.shape[1]))
        else:
            raise ValueError("modulation batch must be 1 or equal to x batch")
    Cmod = mod2d.shape[1]

    # ---- AdaIN layer MLP packing (both layers stacked on a leading axis of 2) ----
    def pack_adain(p):
        w1t = jnp.transpose(p["w1"], (1, 0))                        # (Cmod, nh)
        b1 = p["b1"][None, :]                                       # (1, nh)
        wgb = jnp.concatenate([p["wg"], p["wb"]], axis=0)           # (2C, nh)
        bgb = jnp.concatenate([p["bg"], p["bb"]], axis=0)[:, None]  # (2C, 1)
        return w1t, b1, wgb, bgb

    w1t_a, b1_a, wgb_a, bgb_a = pack_adain(params["adain1"])
    w1t_b, b1_b, wgb_b, bgb_b = pack_adain(params["adain2"])
    w1t_s = jnp.stack([w1t_a, w1t_b])                               # (2, Cmod, nh)
    b1_s = jnp.stack([b1_a, b1_b])                                  # (2, 1, nh)
    wgb_s = jnp.stack([wgb_a, wgb_b])                               # (2, 2C, nh)
    bgb_s = jnp.stack([bgb_a, bgb_b])                               # (2, 2C, 1)
    nh = w1t_s.shape[2]

    # ---- Conv weight packing: OIHW -> (Cout, 9*Cin), tap-major rows matching the
    #      sublane-stacked taps in the kernel (row = tap*C + cin). ----
    def pack_conv(w, b):
        wt = jnp.transpose(w, (0, 2, 3, 1)).reshape(C, 9 * C)
        return wt, b[:, None]

    cw1, cb1 = pack_conv(params["conv1_w"], params["conv1_b"])
    cw2, cb2 = pack_conv(params["conv2_w"], params["conv2_b"])
    cw_s = jnp.stack([cw1, cw2])                                    # (2, C, 9C)
    cb_s = jnp.stack([cb1, cb2])                                    # (2, C, 1)

    # ---- Host-precomputed boundary masks for the 9 taps: (9, 1, HW) f32, resident. ----
    py = np.arange(HW) // W
    px = np.arange(HW) % W
    mask_np = np.zeros((9, 1, HW), np.float32)
    for ky in range(3):
        for kx in range(3):
            dy, dx = ky - 1, kx - 1
            valid = ((py + dy >= 0) & (py + dy < H) &
                     (px + dx >= 0) & (px + dx < W))
            mask_np[ky * 3 + kx, 0] = valid.astype(np.float32)
    mask_arr = jnp.asarray(mask_np)

    # ---- Batch blocking: amortize per-grid-step overhead, but keep >= 2 grid steps
    #      when B >= 2 so the "parallel" axis feeds both v7x TensorCores. ----
    if B <= 1:
        bblk = 1
    else:
        bblk = max(1, min(16, -(-B // 2)))
    num_blocks = pl.cdiv(B, bblk)
    B_pad = num_blocks * bblk

    x_flat = x_nchw.reshape(B, C, HW)                               # H*W in lanes
    m_col = mod2d[:, :, None]                                       # (B, Cmod, 1)
    if B_pad != B:
        pad = B_pad - B
        x_flat = jnp.pad(x_flat, ((0, pad), (0, 0), (0, 0)))
        m_col = jnp.pad(m_col, ((0, pad), (0, 0), (0, 0)))

    kern = functools.partial(_adain_fused_kernel,
                             Bblk=bblk, C=C, H=H, W=W, eps=1e-5, slope=0.2)
    const3 = lambda i: (0, 0, 0)

    out = pl.pallas_call(
        kern,
        out_shape=jax.ShapeDtypeStruct((B_pad, C, HW), jnp.float32),
        grid=(num_blocks,),
        in_specs=[
            pl.BlockSpec((bblk, C, HW), lambda i: (i, 0, 0)),       # x block
            pl.BlockSpec((bblk, Cmod, 1), lambda i: (i, 0, 0)),     # modulation columns
            pl.BlockSpec((2, Cmod, nh), const3),                    # mlp_shared weights
            pl.BlockSpec((2, 1, nh), const3),                       # mlp_shared biases
            pl.BlockSpec((2, 2 * C, nh), const3),                   # fused [wg|wb]
            pl.BlockSpec((2, 2 * C, 1), const3),                    # fused [bg|bb]
            pl.BlockSpec((2, C, 9 * C), const3),                    # conv weights (packed)
            pl.BlockSpec((2, C, 1), const3),                        # conv biases
            pl.BlockSpec((9, 1, HW), const3),                       # tap boundary masks
        ],
        out_specs=pl.BlockSpec((bblk, C, HW), lambda i: (i, 0, 0)),
        compiler_params=pltpu.CompilerParams(
            dimension_semantics=("parallel",)),
    )(x_flat, m_col, w1t_s, b1_s, wgb_s, bgb_s, cw_s, cb_s, mask_arr)

    return out[:B].reshape(B, C, H, W)


# ----------------------------------------------------------------------------------
# Deterministic parameter init (PyTorch Linear / Conv2d style shapes and bounds)
# ----------------------------------------------------------------------------------
def _linear_params(key, in_f, out_f):
    kw, kb = jax.random.split(key)
    bound = 1.0 / np.sqrt(in_f)
    w = jax.random.uniform(kw, (out_f, in_f), jnp.float32, -bound, bound)
    b = jax.random.uniform(kb, (out_f,), jnp.float32, -bound, bound)
    return w, b


def _conv_params(key, cin, cout):
    kw, kb = jax.random.split(key)
    bound = 1.0 / np.sqrt(cin * 9)
    w = jax.random.uniform(kw, (cout, cin, 3, 3), jnp.float32, -bound, bound)
    b = jax.random.uniform(kb, (cout,), jnp.float32, -bound, bound)
    return w, b


def init_params(key, input_channel, modulation_channel, nhidden=256):
    ks = jax.random.split(key, 8)

    def adain_layer(k0, k1, k2):
        w1, b1 = _linear_params(k0, modulation_channel, nhidden)
        wg, bg = _linear_params(k1, nhidden, input_channel)
        wb, bb = _linear_params(k2, nhidden, input_channel)
        return {"w1": w1, "b1": b1, "wg": wg, "bg": bg, "wb": wb, "bb": bb}

    c1w, c1b = _conv_params(ks[6], input_channel, input_channel)
    c2w, c2b = _conv_params(ks[7], input_channel, input_channel)
    return {
        "adain1": adain_layer(ks[0], ks[1], ks[2]),
        "adain2": adain_layer(ks[3], ks[4], ks[5]),
        "conv1_w": c1w, "conv1_b": c1b,
        "conv2_w": c2w, "conv2_b": c2b,
    }


# ----------------------------------------------------------------------------------
# Pure-JAX reference (for correctness check)
# ----------------------------------------------------------------------------------
def _adain_layer_ref(h, mod2d, p):
    mean = jnp.mean(h, axis=(2, 3), keepdims=True)
    var = jnp.mean((h - mean) ** 2, axis=(2, 3), keepdims=True)
    norm = (h - mean) * jax.lax.rsqrt(var + 1e-5)
    actv = jnp.maximum(mod2d @ p["w1"].T + p["b1"], 0.0)
    gamma = actv @ p["wg"].T + p["bg"]
    beta = actv @ p["wb"].T + p["bb"]
    return norm * (1.0 + gamma[:, :, None, None]) + beta[:, :, None, None]


def _conv3x3_ref(h, w, b):
    out = jax.lax.conv_general_dilated(
        h, w, window_strides=(1, 1), padding="SAME",
        dimension_numbers=("NCHW", "OIHW", "NCHW"))
    return out + b[None, :, None, None]


def _adain_ref(x, modulation, params):
    mod2d = modulation.reshape(modulation.shape[0], -1)
    h = _adain_layer_ref(x, mod2d, params["adain1"])
    h = jnp.where(h > 0, h, 0.2 * h)
    h = _conv3x3_ref(h, params["conv1_w"], params["conv1_b"])
    h = _adain_layer_ref(h, mod2d, params["adain2"])
    h = jnp.where(h > 0, h, 0.2 * h)
    h = _conv3x3_ref(h, params["conv2_w"], params["conv2_b"])
    return h


# ----------------------------------------------------------------------------------
if __name__ == "__main__":
    input_channel = 4
    modulation_channel = 16
    B, H, W = 2, 16, 16

    root = jax.random.PRNGKey(0)
    kp, kx, km = jax.random.split(root, 3)
    params = init_params(kp, input_channel, modulation_channel)

    x = jax.random.normal(kx, (B, input_channel, H, W), jnp.float32)        # NCHW
    modulation = jax.random.normal(km, (B, modulation_channel), jnp.float32)

    out = jax.jit(adain_forward)(x, modulation, params)
    out = jax.block_until_ready(out)

    assert out.shape == (B, input_channel, H, W), out.shape
    ref = jax.block_until_ready(_adain_ref(x, modulation, params))
    np.testing.assert_allclose(np.asarray(out), np.asarray(ref), rtol=2e-2, atol=2e-2)

    print("KERNEL_OK")
</pallas_src>

<mosaic_0001>
module attributes {stable_mosaic.version = 11 : i64} {
  func.func @_adain_fused_kernel(%arg0: i32, %arg1: memref<1x4x256xf32, #tpu.memory_space<vmem>>, %arg2: memref<1x16x1xf32, #tpu.memory_space<vmem>>, %arg3: memref<2x16x256xf32, #tpu.memory_space<vmem>>, %arg4: memref<2x1x256xf32, #tpu.memory_space<vmem>>, %arg5: memref<2x8x256xf32, #tpu.memory_space<vmem>>, %arg6: memref<2x8x1xf32, #tpu.memory_space<vmem>>, %arg7: memref<2x4x36xf32, #tpu.memory_space<vmem>>, %arg8: memref<2x4x1xf32, #tpu.memory_space<vmem>>, %arg9: memref<9x1x256xf32, #tpu.memory_space<vmem>>, %arg10: memref<1x4x256xf32, #tpu.memory_space<vmem>>) attributes {dimension_semantics = [#tpu.dimension_semantics<parallel>], iteration_bounds = array<i64: 2>, scalar_prefetch = 0 : i64, scratch_operands = 0 : i64, tpu.core_type = #tpu.core_type<tc>, window_params = [{transform_indices = @transform_0, window_bounds = array<i64: 1, 4, 256>}, {transform_indices = @transform_1, window_bounds = array<i64: 1, 16, 1>}, {pipeline_mode = #tpu.pipeline_mode<synchronous>, transform_indices = @transform_2, window_bounds = array<i64: 2, 16, 256>}, {pipeline_mode = #tpu.pipeline_mode<synchronous>, transform_indices = @transform_3, window_bounds = array<i64: 2, 1, 256>}, {pipeline_mode = #tpu.pipeline_mode<synchronous>, transform_indices = @transform_4, window_bounds = array<i64: 2, 8, 256>}, {pipeline_mode = #tpu.pipeline_mode<synchronous>, transform_indices = @transform_5, window_bounds = array<i64: 2, 8, 1>}, {pipeline_mode = #tpu.pipeline_mode<synchronous>, transform_indices = @transform_6, window_bounds = array<i64: 2, 4, 36>}, {pipeline_mode = #tpu.pipeline_mode<synchronous>, transform_indices = @transform_7, window_bounds = array<i64: 2, 4, 1>}, {pipeline_mode = #tpu.pipeline_mode<synchronous>, transform_indices = @transform_8, window_bounds = array<i64: 9, 1, 256>}, {transform_indices = @transform_9, window_bounds = array<i64: 1, 4, 256>}]} {
    %c0 = arith.constant 0 : index
    %c0_0 = arith.constant 0 : index
    %c0_1 = arith.constant 0 : index
    %0 = vector.load %arg3[%c0, %c0_0, %c0_1] : memref<2x16x256xf32, #tpu.memory_space<vmem>>, vector<1x16x256xf32>
    %1 = vector.shape_cast %0 : vector<1x16x256xf32> to vector<16x256xf32>
    %c1 = arith.constant 1 : index
    %c0_2 = arith.constant 0 : index
    %c0_3 = arith.constant 0 : index
    %2 = vector.load %arg3[%c1, %c0_2, %c0_3] : memref<2x16x256xf32, #tpu.memory_space<vmem>>, vector<1x16x256xf32>
    %3 = vector.shape_cast %2 : vector<1x16x256xf32> to vector<16x256xf32>
    %c0_4 = arith.constant 0 : index
    %c0_5 = arith.constant 0 : index
    %c0_6 = arith.constant 0 : index
    %4 = vector.load %arg4[%c0_4, %c0_5, %c0_6] : memref<2x1x256xf32, #tpu.memory_space<vmem>>, vector<1x1x256xf32>
    %5 = vector.shape_cast %4 : vector<1x1x256xf32> to vector<1x256xf32>
    %c1_7 = arith.constant 1 : index
    %c0_8 = arith.constant 0 : index
    %c0_9 = arith.constant 0 : index
    %6 = vector.load %arg4[%c1_7, %c0_8, %c0_9] : memref<2x1x256xf32, #tpu.memory_space<vmem>>, vector<1x1x256xf32>
    %7 = vector.shape_cast %6 : vector<1x1x256xf32> to vector<1x256xf32>
    %c0_10 = arith.constant 0 : index
    %c0_11 = arith.constant 0 : index
    %c0_12 = arith.constant 0 : index
    %8 = vector.load %arg5[%c0_10, %c0_11, %c0_12] : memref<2x8x256xf32, #tpu.memory_space<vmem>>, vector<1x8x256xf32>
    %9 = vector.shape_cast %8 : vector<1x8x256xf32> to vector<8x256xf32>
    %c1_13 = arith.constant 1 : index
    %c0_14 = arith.constant 0 : index
    %c0_15 = arith.constant 0 : index
    %10 = vector.load %arg5[%c1_13, %c0_14, %c0_15] : memref<2x8x256xf32, #tpu.memory_space<vmem>>, vector<1x8x256xf32>
    %11 = vector.shape_cast %10 : vector<1x8x256xf32> to vector<8x256xf32>
    %c0_16 = arith.constant 0 : index
    %c0_17 = arith.constant 0 : index
    %c0_18 = arith.constant 0 : index
    %12 = vector.load %arg6[%c0_16, %c0_17, %c0_18] : memref<2x8x1xf32, #tpu.memory_space<vmem>>, vector<1x8x1xf32>
    %13 = vector.shape_cast %12 : vector<1x8x1xf32> to vector<8x1xf32>
    %c1_19 = arith.constant 1 : index
    %c0_20 = arith.constant 0 : index
    %c0_21 = arith.constant 0 : index
    %14 = vector.load %arg6[%c1_19, %c0_20, %c0_21] : memref<2x8x1xf32, #tpu.memory_space<vmem>>, vector<1x8x1xf32>
    %15 = vector.shape_cast %14 : vector<1x8x1xf32> to vector<8x1xf32>
    %c0_22 = arith.constant 0 : index
    %c0_23 = arith.constant 0 : index
    %c0_24 = arith.constant 0 : index
    %16 = vector.load %arg7[%c0_22, %c0_23, %c0_24] : memref<2x4x36xf32, #tpu.memory_space<vmem>>, vector<1x4x36xf32>
    %17 = vector.shape_cast %16 : vector<1x4x36xf32> to vector<4x36xf32>
    %c1_25 = arith.constant 1 : index
    %c0_26 = arith.constant 0 : index
    %c0_27 = arith.constant 0 : index
    %18 = vector.load %arg7[%c1_25, %c0_26, %c0_27] : memref<2x4x36xf32, #tpu.memory_space<vmem>>, vector<1x4x36xf32>
    %19 = vector.shape_cast %18 : vector<1x4x36xf32> to vector<4x36xf32>
    %c0_28 = arith.constant 0 : index
    %c0_29 = arith.constant 0 : index
    %c0_30 = arith.constant 0 : index
    %20 = vector.load %arg8[%c0_28, %c0_29, %c0_30] : memref<2x4x1xf32, #tpu.memory_space<vmem>>, vector<1x4x1xf32>
    %21 = vector.shape_cast %20 : vector<1x4x1xf32> to vector<4x1xf32>
    %c1_31 = arith.constant 1 : index
    %c0_32 = arith.constant 0 : index
    %c0_33 = arith.constant 0 : index
    %22 = vector.load %arg8[%c1_31, %c0_32, %c0_33] : memref<2x4x1xf32, #tpu.memory_space<vmem>>, vector<1x4x1xf32>
    %23 = vector.shape_cast %22 : vector<1x4x1xf32> to vector<4x1xf32>
    %c0_34 = arith.constant 0 : index
    %c0_35 = arith.constant 0 : index
    %c0_36 = arith.constant 0 : index
    %24 = vector.load %arg9[%c0_34, %c0_35, %c0_36] : memref<9x1x256xf32, #tpu.memory_space<vmem>>, vector<1x1x256xf32>
    %25 = vector.shape_cast %24 : vector<1x1x256xf32> to vector<1x256xf32>
    %c1_37 = arith.constant 1 : index
    %c0_38 = arith.constant 0 : index
    %c0_39 = arith.constant 0 : index
    %26 = vector.load %arg9[%c1_37, %c0_38, %c0_39] : memref<9x1x256xf32, #tpu.memory_space<vmem>>, vector<1x1x256xf32>
    %27 = vector.shape_cast %26 : vector<1x1x256xf32> to vector<1x256xf32>
    %c2 = arith.constant 2 : index
    %c0_40 = arith.constant 0 : index
    %c0_41 = arith.constant 0 : index
    %28 = vector.load %arg9[%c2, %c0_40, %c0_41] : memref<9x1x256xf32, #tpu.memory_space<vmem>>, vector<1x1x256xf32>
    %29 = vector.shape_cast %28 : vector<1x1x256xf32> to vector<1x256xf32>
    %c3 = arith.constant 3 : index
    %c0_42 = arith.constant 0 : index
    %c0_43 = arith.constant 0 : index
    %30 = vector.load %arg9[%c3, %c0_42, %c0_43] : memref<9x1x256xf32, #tpu.memory_space<vmem>>, vector<1x1x256xf32>
    %31 = vector.shape_cast %30 : vector<1x1x256xf32> to vector<1x256xf32>
    %c4 = arith.constant 4 : index
    %c0_44 = arith.constant 0 : index
    %c0_45 = arith.constant 0 : index
    %32 = vector.load %arg9[%c4, %c0_44, %c0_45] : memref<9x1x256xf32, #tpu.memory_space<vmem>>, vector<1x1x256xf32>
    %33 = vector.shape_cast %32 : vector<1x1x256xf32> to vector<1x256xf32>
    %c5 = arith.constant 5 : index
    %c0_46 = arith.constant 0 : index
    %c0_47 = arith.constant 0 : index
    %34 = vector.load %arg9[%c5, %c0_46, %c0_47] : memref<9x1x256xf32, #tpu.memory_space<vmem>>, vector<1x1x256xf32>
    %35 = vector.shape_cast %34 : vector<1x1x256xf32> to vector<1x256xf32>
    %c6 = arith.constant 6 : index
    %c0_48 = arith.constant 0 : index
    %c0_49 = arith.constant 0 : index
    %36 = vector.load %arg9[%c6, %c0_48, %c0_49] : memref<9x1x256xf32, #tpu.memory_space<vmem>>, vector<1x1x256xf32>
    %37 = vector.shape_cast %36 : vector<1x1x256xf32> to vector<1x256xf32>
    %c7 = arith.constant 7 : index
    %c0_50 = arith.constant 0 : index
    %c0_51 = arith.constant 0 : index
    %38 = vector.load %arg9[%c7, %c0_50, %c0_51] : memref<9x1x256xf32, #tpu.memory_space<vmem>>, vector<1x1x256xf32>
    %39 = vector.shape_cast %38 : vector<1x1x256xf32> to vector<1x256xf32>
    %c8 = arith.constant 8 : index
    %c0_52 = arith.constant 0 : index
    %c0_53 = arith.constant 0 : index
    %40 = vector.load %arg9[%c8, %c0_52, %c0_53] : memref<9x1x256xf32, #tpu.memory_space<vmem>>, vector<1x1x256xf32>
    %41 = vector.shape_cast %40 : vector<1x1x256xf32> to vector<1x256xf32>
    %c0_54 = arith.constant 0 : index
    %c0_55 = arith.constant 0 : index
    %c0_56 = arith.constant 0 : index
    %42 = vector.load %arg1[%c0_54, %c0_55, %c0_56] : memref<1x4x256xf32, #tpu.memory_space<vmem>>, vector<1x4x256xf32>
    %43 = vector.shape_cast %42 : vector<1x4x256xf32> to vector<4x256xf32>
    %c0_57 = arith.constant 0 : index
    %c0_58 = arith.constant 0 : index
    %c0_59 = arith.constant 0 : index
    %44 = vector.load %arg2[%c0_57, %c0_58, %c0_59] : memref<1x16x1xf32, #tpu.memory_space<vmem>>, vector<1x16x1xf32>
    %45 = vector.shape_cast %44 : vector<1x16x1xf32> to vector<16x1xf32>
    %46 = vector.broadcast %45 : vector<16x1xf32> to vector<16x256xf32>
    %47 = arith.mulf %1, %46 : vector<16x256xf32>
    %cst = arith.constant dense<0.000000e+00> : vector<256xf32>
    %48 = vector.multi_reduction <add>, %47, %cst [0] : vector<16x256xf32> to vector<256xf32>
    %49 = vector.shape_cast %48 : vector<256xf32> to vector<1x256xf32>
    %50 = arith.addf %49, %5 : vector<1x256xf32>
    %cst_60 = arith.constant 0.000000e+00 : f32
    %51 = vector.broadcast %cst_60 : f32 to vector<1x256xf32>
    %52 = arith.maximumf %50, %51 : vector<1x256xf32>
    %53 = vector.broadcast %52 : vector<1x256xf32> to vector<8x256xf32>
    %54 = arith.mulf %9, %53 : vector<8x256xf32>
    %cst_61 = arith.constant dense<0.000000e+00> : vector<8xf32>
    %55 = vector.multi_reduction <add>, %54, %cst_61 [1] : vector<8x256xf32> to vector<8xf32>
    %56 = vector.shape_cast %55 : vector<8xf32> to vector<8x1xf32>
    %57 = arith.addf %56, %13 : vector<8x1xf32>
    %58 = vector.extract_strided_slice %57 {offsets = [0, 0], sizes = [4, 1], strides = [1, 1]} : vector<8x1xf32> to vector<4x1xf32>
    %59 = vector.extract_strided_slice %57 {offsets = [4, 0], sizes = [4, 1], strides = [1, 1]} : vector<8x1xf32> to vector<4x1xf32>
    %cst_62 = arith.constant dense<0.000000e+00> : vector<4xf32>
    %60 = vector.multi_reduction <add>, %43, %cst_62 [1] : vector<4x256xf32> to vector<4xf32>
    %61 = vector.shape_cast %60 : vector<4xf32> to vector<4x1xf32>
    %cst_63 = arith.constant 2.560000e+02 : f32
    %62 = vector.broadcast %cst_63 : f32 to vector<4x1xf32>
    %63 = arith.divf %61, %62 : vector<4x1xf32>
    %64 = vector.broadcast %63 : vector<4x1xf32> to vector<4x256xf32>
    %65 = arith.subf %43, %64 : vector<4x256xf32>
    %66 = arith.mulf %65, %65 : vector<4x256xf32>
    %cst_64 = arith.constant dense<0.000000e+00> : vector<4xf32>
    %67 = vector.multi_reduction <add>, %66, %cst_64 [1] : vector<4x256xf32> to vector<4xf32>
    %68 = vector.shape_cast %67 : vector<4xf32> to vector<4x1xf32>
    %cst_65 = arith.constant 2.560000e+02 : f32
    %69 = vector.broadcast %cst_65 : f32 to vector<4x1xf32>
    %70 = arith.divf %68, %69 : vector<4x1xf32>
    %71 = vector.broadcast %63 : vector<4x1xf32> to vector<4x256xf32>
    %72 = arith.subf %43, %71 : vector<4x256xf32>
    %cst_66 = arith.constant 9.99999974E-6 : f32
    %73 = vector.broadcast %cst_66 : f32 to vector<4x1xf32>
    %74 = arith.addf %70, %73 : vector<4x1xf32>
    %75 = math.rsqrt %74 : vector<4x1xf32>
    %76 = vector.broadcast %75 : vector<4x1xf32> to vector<4x256xf32>
    %77 = arith.mulf %72, %76 : vector<4x256xf32>
    %cst_67 = arith.constant 1.000000e+00 : f32
    %78 = vector.broadcast %cst_67 : f32 to vector<4x1xf32>
    %79 = arith.addf %78, %58 : vector<4x1xf32>
    %80 = vector.broadcast %79 : vector<4x1xf32> to vector<4x256xf32>
    %81 = arith.mulf %77, %80 : vector<4x256xf32>
    %82 = vector.broadcast %59 : vector<4x1xf32> to vector<4x256xf32>
    %83 = arith.addf %81, %82 : vector<4x256xf32>
    %cst_68 = arith.constant 0.000000e+00 : f32
    %84 = vector.broadcast %cst_68 : f32 to vector<4x256xf32>
    %85 = arith.cmpf ogt, %83, %84 : vector<4x256xf32>
    %cst_69 = arith.constant 2.000000e-01 : f32
    %86 = vector.broadcast %cst_69 : f32 to vector<4x256xf32>
    %87 = arith.mulf %86, %83 : vector<4x256xf32>
    %88 = arith.select %85, %83, %87 : vector<4x256xi1>, vector<4x256xf32>
    %c17_i32 = arith.constant 17 : i32
    %89 = tpu.dynamic_rotate %88 by %c17_i32 dim 1 : vector<4x256xf32>, i32 -> vector<4x256xf32>
    %90 = vector.broadcast %25 : vector<1x256xf32> to vector<4x256xf32>
    %91 = arith.mulf %89, %90 : vector<4x256xf32>
    %c16_i32 = arith.constant 16 : i32
    %92 = tpu.dynamic_rotate %88 by %c16_i32 dim 1 : vector<4x256xf32>, i32 -> vector<4x256xf32>
    %93 = vector.broadcast %27 : vector<1x256xf32> to vector<4x256xf32>
    %94 = arith.mulf %92, %93 : vector<4x256xf32>
    %c15_i32 = arith.constant 15 : i32
    %95 = tpu.dynamic_rotate %88 by %c15_i32 dim 1 : vector<4x256xf32>, i32 -> vector<4x256xf32>
    %96 = vector.broadcast %29 : vector<1x256xf32> to vector<4x256xf32>
    %97 = arith.mulf %95, %96 : vector<4x256xf32>
    %c1_i32 = arith.constant 1 : i32
    %98 = tpu.dynamic_rotate %88 by %c1_i32 dim 1 : vector<4x256xf32>, i32 -> vector<4x256xf32>
    %99 = vector.broadcast %31 : vector<1x256xf32> to vector<4x256xf32>
    %100 = arith.mulf %98, %99 : vector<4x256xf32>
    %101 = vector.broadcast %33 : vector<1x256xf32> to vector<4x256xf32>
    %102 = arith.mulf %88, %101 : vector<4x256xf32>
    %c255_i32 = arith.constant 255 : i32
    %103 = tpu.dynamic_rotate %88 by %c255_i32 dim 1 : vector<4x256xf32>, i32 -> vector<4x256xf32>
    %104 = vector.broadcast %35 : vector<1x256xf32> to vector<4x256xf32>
    %105 = arith.mulf %103, %104 : vector<4x256xf32>
    %c241_i32 = arith.constant 241 : i32
    %106 = tpu.dynamic_rotate %88 by %c241_i32 dim 1 : vector<4x256xf32>, i32 -> vector<4x256xf32>
    %107 = vector.broadcast %37 : vector<1x256xf32> to vector<4x256xf32>
    %108 = arith.mulf %106, %107 : vector<4x256xf32>
    %c240_i32 = arith.constant 240 : i32
    %109 = tpu.dynamic_rotate %88 by %c240_i32 dim 1 : vector<4x256xf32>, i32 -> vector<4x256xf32>
    %110 = vector.broadcast %39 : vector<1x256xf32> to vector<4x256xf32>
    %111 = arith.mulf %109, %110 : vector<4x256xf32>
    %c239_i32 = arith.constant 239 : i32
    %112 = tpu.dynamic_rotate %88 by %c239_i32 dim 1 : vector<4x256xf32>, i32 -> vector<4x256xf32>
    %113 = vector.broadcast %41 : vector<1x256xf32> to vector<4x256xf32>
    %114 = arith.mulf %112, %113 : vector<4x256xf32>
    %115 = tpu.concatenate %91, %94, %97, %100, %102, %105, %108, %111, %114 in 0 : vector<4x256xf32>, vector<4x256xf32>, vector<4x256xf32>, vector<4x256xf32>, vector<4x256xf32>, vector<4x256xf32>, vector<4x256xf32>, vector<4x256xf32>, vector<4x256xf32> -> vector<36x256xf32>
    %cst_70 = arith.constant dense<0.000000e+00> : vector<4x256xf32>
    %116 = tpu.matmul %17, %115, %cst_70 {dimension_numbers = #tpu.dot_dimension_numbers<[1], [0], [0], [1], [0, 0, 1, 1], [], []>} : vector<4x36xf32>, vector<36x256xf32>, vector<4x256xf32> -> vector<4x256xf32>
    %117 = vector.broadcast %21 : vector<4x1xf32> to vector<4x256xf32>
    %118 = arith.addf %116, %117 : vector<4x256xf32>
    %119 = vector.broadcast %45 : vector<16x1xf32> to vector<16x256xf32>
    %120 = arith.mulf %3, %119 : vector<16x256xf32>
    %cst_71 = arith.constant dense<0.000000e+00> : vector<256xf32>
    %121 = vector.multi_reduction <add>, %120, %cst_71 [0] : vector<16x256xf32> to vector<256xf32>
    %122 = vector.shape_cast %121 : vector<256xf32> to vector<1x256xf32>
    %123 = arith.addf %122, %7 : vector<1x256xf32>
    %cst_72 = arith.constant 0.000000e+00 : f32
    %124 = vector.broadcast %cst_72 : f32 to vector<1x256xf32>
    %125 = arith.maximumf %123, %124 : vector<1x256xf32>
    %126 = vector.broadcast %125 : vector<1x256xf32> to vector<8x256xf32>
    %127 = arith.mulf %11, %126 : vector<8x256xf32>
    %cst_73 = arith.constant dense<0.000000e+00> : vector<8xf32>
    %128 = vector.multi_reduction <add>, %127, %cst_73 [1] : vector<8x256xf32> to vector<8xf32>
    %129 = vector.shape_cast %128 : vector<8xf32> to vector<8x1xf32>
    %130 = arith.addf %129, %15 : vector<8x1xf32>
    %131 = vector.extract_strided_slice %130 {offsets = [0, 0], sizes = [4, 1], strides = [1, 1]} : vector<8x1xf32> to vector<4x1xf32>
    %132 = vector.extract_strided_slice %130 {offsets = [4, 0], sizes = [4, 1], strides = [1, 1]} : vector<8x1xf32> to vector<4x1xf32>
    %cst_74 = arith.constant dense<0.000000e+00> : vector<4xf32>
    %133 = vector.multi_reduction <add>, %118, %cst_74 [1] : vector<4x256xf32> to vector<4xf32>
    %134 = vector.shape_cast %133 : vector<4xf32> to vector<4x1xf32>
    %cst_75 = arith.constant 2.560000e+02 : f32
    %135 = vector.broadcast %cst_75 : f32 to vector<4x1xf32>
    %136 = arith.divf %134, %135 : vector<4x1xf32>
    %137 = vector.broadcast %136 : vector<4x1xf32> to vector<4x256xf32>
    %138 = arith.subf %118, %137 : vector<4x256xf32>
    %139 = arith.mulf %138, %138 : vector<4x256xf32>
    %cst_76 = arith.constant dense<0.000000e+00> : vector<4xf32>
    %140 = vector.multi_reduction <add>, %139, %cst_76 [1] : vector<4x256xf32> to vector<4xf32>
    %141 = vector.shape_cast %140 : vector<4xf32> to vector<4x1xf32>
    %cst_77 = arith.constant 2.560000e+02 : f32
    %142 = vector.broadcast %cst_77 : f32 to vector<4x1xf32>
    %143 = arith.divf %141, %142 : vector<4x1xf32>
    %144 = vector.broadcast %136 : vector<4x1xf32> to vector<4x256xf32>
    %145 = arith.subf %118, %144 : vector<4x256xf32>
    %cst_78 = arith.constant 9.99999974E-6 : f32
    %146 = vector.broadcast %cst_78 : f32 to vector<4x1xf32>
    %147 = arith.addf %143, %146 : vector<4x1xf32>
    %148 = math.rsqrt %147 : vector<4x1xf32>
    %149 = vector.broadcast %148 : vector<4x1xf32> to vector<4x256xf32>
    %150 = arith.mulf %145, %149 : vector<4x256xf32>
    %cst_79 = arith.constant 1.000000e+00 : f32
    %151 = vector.broadcast %cst_79 : f32 to vector<4x1xf32>
    %152 = arith.addf %151, %131 : vector<4x1xf32>
    %153 = vector.broadcast %152 : vector<4x1xf32> to vector<4x256xf32>
    %154 = arith.mulf %150, %153 : vector<4x256xf32>
    %155 = vector.broadcast %132 : vector<4x1xf32> to vector<4x256xf32>
    %156 = arith.addf %154, %155 : vector<4x256xf32>
    %cst_80 = arith.constant 0.000000e+00 : f32
    %157 = vector.broadcast %cst_80 : f32 to vector<4x256xf32>
    %158 = arith.cmpf ogt, %156, %157 : vector<4x256xf32>
    %cst_81 = arith.constant 2.000000e-01 : f32
    %159 = vector.broadcast %cst_81 : f32 to vector<4x256xf32>
    %160 = arith.mulf %159, %156 : vector<4x256xf32>
    %161 = arith.select %158, %156, %160 : vector<4x256xi1>, vector<4x256xf32>
    %c17_i32_82 = arith.constant 17 : i32
    %162 = tpu.dynamic_rotate %161 by %c17_i32_82 dim 1 : vector<4x256xf32>, i32 -> vector<4x256xf32>
    %163 = vector.broadcast %25 : vector<1x256xf32> to vector<4x256xf32>
    %164 = arith.mulf %162, %163 : vector<4x256xf32>
    %c16_i32_83 = arith.constant 16 : i32
    %165 = tpu.dynamic_rotate %161 by %c16_i32_83 dim 1 : vector<4x256xf32>, i32 -> vector<4x256xf32>
    %166 = vector.broadcast %27 : vector<1x256xf32> to vector<4x256xf32>
    %167 = arith.mulf %165, %166 : vector<4x256xf32>
    %c15_i32_84 = arith.constant 15 : i32
    %168 = tpu.dynamic_rotate %161 by %c15_i32_84 dim 1 : vector<4x256xf32>, i32 -> vector<4x256xf32>
    %169 = vector.broadcast %29 : vector<1x256xf32> to vector<4x256xf32>
    %170 = arith.mulf %168, %169 : vector<4x256xf32>
    %c1_i32_85 = arith.constant 1 : i32
    %171 = tpu.dynamic_rotate %161 by %c1_i32_85 dim 1 : vector<4x256xf32>, i32 -> vector<4x256xf32>
    %172 = vector.broadcast %31 : vector<1x256xf32> to vector<4x256xf32>
    %173 = arith.mulf %171, %172 : vector<4x256xf32>
    %174 = vector.broadcast %33 : vector<1x256xf32> to vector<4x256xf32>
    %175 = arith.mulf %161, %174 : vector<4x256xf32>
    %c255_i32_86 = arith.constant 255 : i32
    %176 = tpu.dynamic_rotate %161 by %c255_i32_86 dim 1 : vector<4x256xf32>, i32 -> vector<4x256xf32>
    %177 = vector.broadcast %35 : vector<1x256xf32> to vector<4x256xf32>
    %178 = arith.mulf %176, %177 : vector<4x256xf32>
    %c241_i32_87 = arith.constant 241 : i32
    %179 = tpu.dynamic_rotate %161 by %c241_i32_87 dim 1 : vector<4x256xf32>, i32 -> vector<4x256xf32>
    %180 = vector.broadcast %37 : vector<1x256xf32> to vector<4x256xf32>
    %181 = arith.mulf %179, %180 : vector<4x256xf32>
    %c240_i32_88 = arith.constant 240 : i32
    %182 = tpu.dynamic_rotate %161 by %c240_i32_88 dim 1 : vector<4x256xf32>, i32 -> vector<4x256xf32>
    %183 = vector.broadcast %39 : vector<1x256xf32> to vector<4x256xf32>
    %184 = arith.mulf %182, %183 : vector<4x256xf32>
    %c239_i32_89 = arith.constant 239 : i32
    %185 = tpu.dynamic_rotate %161 by %c239_i32_89 dim 1 : vector<4x256xf32>, i32 -> vector<4x256xf32>
    %186 = vector.broadcast %41 : vector<1x256xf32> to vector<4x256xf32>
    %187 = arith.mulf %185, %186 : vector<4x256xf32>
    %188 = tpu.concatenate %164, %167, %170, %173, %175, %178, %181, %184, %187 in 0 : vector<4x256xf32>, vector<4x256xf32>, vector<4x256xf32>, vector<4x256xf32>, vector<4x256xf32>, vector<4x256xf32>, vector<4x256xf32>, vector<4x256xf32>, vector<4x256xf32> -> vector<36x256xf32>
    %cst_90 = arith.constant dense<0.000000e+00> : vector<4x256xf32>
    %189 = tpu.matmul %19, %188, %cst_90 {dimension_numbers = #tpu.dot_dimension_numbers<[1], [0], [0], [1], [0, 0, 1, 1], [], []>} : vector<4x36xf32>, vector<36x256xf32>, vector<4x256xf32> -> vector<4x256xf32>
    %190 = vector.broadcast %23 : vector<4x1xf32> to vector<4x256xf32>
    %191 = arith.addf %189, %190 : vector<4x256xf32>
    %c0_91 = arith.constant 0 : index
    %c0_92 = arith.constant 0 : index
    %c0_93 = arith.constant 0 : index
    %192 = vector.load %arg10[%c0_91, %c0_92, %c0_93] : memref<1x4x256xf32, #tpu.memory_space<vmem>>, vector<1x4x256xf32>
    %193 = vector.shape_cast %192 : vector<1x4x256xf32> to vector<4x256xf32>
    %194 = vector.shape_cast %191 : vector<4x256xf32> to vector<1x4x256xf32>
    tpu.vector_store %arg10[%c0_91, %c0_92, %c0_93], %194 {strides = array<i32>} : memref<1x4x256xf32, #tpu.memory_space<vmem>>, vector<1x4x256xf32>,
    return
  }
  func.func @transform_0(%arg0: i32) -> (i32, i32, i32) {
    %c0_i32 = arith.constant 0 : i32
    %c0_i32_0 = arith.constant 0 : i32
    %c0_i32_1 = arith.constant 0 : i32
    return %arg0, %c0_i32, %c0_i32_0 : i32, i32, i32
  }
  func.func @transform_1(%arg0: i32) -> (i32, i32, i32) {
    %c0_i32 = arith.constant 0 : i32
    %c0_i32_0 = arith.constant 0 : i32
    %c0_i32_1 = arith.constant 0 : i32
    return %arg0, %c0_i32, %c0_i32_0 : i32, i32, i32
  }
  func.func @transform_2(%arg0: i32) -> (i32, i32, i32) {
    %c0_i32 = arith.constant 0 : i32
    %c0_i32_0 = arith.constant 0 : i32
    %c0_i32_1 = arith.constant 0 : i32
    %c0_i32_2 = arith.constant 0 : i32
    return %c0_i32, %c0_i32_0, %c0_i32_1 : i32, i32, i32
  }
  func.func @transform_3(%arg0: i32) -> (i32, i32, i32) {
    %c0_i32 = arith.constant 0 : i32
    %c0_i32_0 = arith.constant 0 : i32
    %c0_i32_1 = arith.constant 0 : i32
    %c0_i32_2 = arith.constant 0 : i32
    return %c0_i32, %c0_i32_0, %c0_i32_1 : i32, i32, i32
  }
  func.func @transform_4(%arg0: i32) -> (i32, i32, i32) {
    %c0_i32 = arith.constant 0 : i32
    %c0_i32_0 = arith.constant 0 : i32
    %c0_i32_1 = arith.constant 0 : i32
    %c0_i32_2 = arith.constant 0 : i32
    return %c0_i32, %c0_i32_0, %c0_i32_1 : i32, i32, i32
  }
  func.func @transform_5(%arg0: i32) -> (i32, i32, i32) {
    %c0_i32 = arith.constant 0 : i32
    %c0_i32_0 = arith.constant 0 : i32
    %c0_i32_1 = arith.constant 0 : i32
    %c0_i32_2 = arith.constant 0 : i32
    return %c0_i32, %c0_i32_0, %c0_i32_1 : i32, i32, i32
  }
  func.func @transform_6(%arg0: i32) -> (i32, i32, i32) {
    %c0_i32 = arith.constant 0 : i32
    %c0_i32_0 = arith.constant 0 : i32
    %c0_i32_1 = arith.constant 0 : i32
    %c0_i32_2 = arith.constant 0 : i32
    return %c0_i32, %c0_i32_0, %c0_i32_1 : i32, i32, i32
  }
  func.func @transform_7(%arg0: i32) -> (i32, i32, i32) {
    %c0_i32 = arith.constant 0 : i32
    %c0_i32_0 = arith.constant 0 : i32
    %c0_i32_1 = arith.constant 0 : i32
    %c0_i32_2 = arith.constant 0 : i32
    return %c0_i32, %c0_i32_0, %c0_i32_1 : i32, i32, i32
  }
  func.func @transform_8(%arg0: i32) -> (i32, i32, i32) {
    %c0_i32 = arith.constant 0 : i32
    %c0_i32_0 = arith.constant 0 : i32
    %c0_i32_1 = arith.constant 0 : i32
    %c0_i32_2 = arith.constant 0 : i32
    return %c0_i32, %c0_i32_0, %c0_i32_1 : i32, i32, i32
  }
  func.func @transform_9(%arg0: i32) -> (i32, i32, i32) {
    %c0_i32 = arith.constant 0 : i32
    %c0_i32_0 = arith.constant 0 : i32
    %c0_i32_1 = arith.constant 0 : i32
    return %arg0, %c0_i32, %c0_i32_0 : i32, i32, i32
  }
}

</mosaic_0001>

<bundles_post_ra>
// kernel: adain_forward.1
= control target key start
LH: loop header
LB: loop body
LE: loop exit
PB: predicated region body
PF: predicated region fallthrough
CT: control target
= control target key end

     0   :  { %s1235_s30 = smov 0   ;;  %s1636_s0 = inlined_call_operand.vmem [shape: f32[2,4,256], index: 0, kind: input, shape index: {}]   ;;  %s1637_s1 = inlined_call_operand.vmem [shape: f32[2,16,1], index: 1, kind: input, shape index: {}]   ;;  %s1638_s2 = inlined_call_operand.vmem [shape: f32[2,16,256], index: 2, kind: input, shape index: {}]   ;;  %s1639_s3 = inlined_call_operand.vmem [shape: f32[2,1,256], index: 3, kind: input, shape index: {}]   ;;  %s1640_s4 = inlined_call_operand.vmem [shape: f32[2,8,256], index: 4, kind: input, shape index: {}]   ;;  %s1641_s5 = inlined_call_operand.vmem [shape: f32[2,8,1], index: 5, kind: input, shape index: {}]   ;;  %s1642_s6 = inlined_call_operand.vmem [shape: f32[2,4,36], index: 6, kind: input, shape index: {}]   ;;  %s1643_s7 = inlined_call_operand.vmem [shape: f32[2,4,1], index: 7, kind: input, shape index: {}]   ;;  %s1644_s8 = inlined_call_operand.vmem [shape: f32[9,1,256], index: 8, kind: input, shape index: {}]   ;;  %s1645_s9 = inlined_call_operand.vmem [shape: f32[2,4,256], index: 9, kind: output, shape index: {}]  }
   0x1 LB: > { %s1094_s10 = sadd.s32 4294967295, %s1171_s30   ;;  %p1098_p0 = scmp.ge.s32.totalorder %s1171_s30, 1  ;;  %s1171_s30 = sphi %s1235_s30, %s19_s30  }
   0x2   : > { %p297_p1 = scmp.lt.s32.totalorder %s1171_s30, 3 }
   0x4   : > { %p298_p2 = pnand %p1098_p0, %p297_p1 }
   0x5   : > { %p338_p3 = scmp.lt.s32.totalorder (!%p298_p2), %s1094_s10, 1  ;;  %s1177_s17 = smov (!%p298_p2), 16  }
   0x6   : > { %301 = sbr.rel (%p298_p2) target bundleno = 1302 (0x516), region = 56  ;;  %s1179_s19 = smov (!%p298_p2), 1  }
   0x7   : > { %s1180_s20 = smov (!%p298_p2), 127   ;;  %s1181_s23 = smov (!%p298_p2), 113  }
   0x8   : > { %s1182_s14 = smov (!%p298_p2), 112   ;;  %s1184_s16 = smov (!%p298_p2), 111  }
   0xb   : > { %v1173_v0 = vmov 0   ;;  %s1647_s10 = smov (!%p338_p3, %s1094_s10), 1  ;;  %vm450_vm0 = vcmask 1043456   ;;  %v1174_v9 = vmov 256.0   ;;  %v353_v15 = vld [vmem:[%s1638_s2] sm:$0xff]  ;;  %v354_v16 = vld [vmem:[%s1638_s2 + $0x8] sm:$0xff] }
   0xc   : > { %1156 = vset.pattern.permute.xlu0 %v1173_v0  ;;  %1157 = vset.pattern.permute.xlu2 %v1173_v0  ;;  %s1134_s11 = sshll.u32 %s1647_s10, 4  ;;  %s1133_s12 = sshll.u32 %s1647_s10, 3  ;;  %1159 = vrcp.f32 %v1174_v9  ;;  %v355_v17 = vld [vmem:[%s1638_s2 + $0x10] sm:$0xff]  ;;  %v356_v18 = vld [vmem:[%s1638_s2 + $0x18] sm:$0xff]  ;;  %v1175_v21 = vmov 839922192  }
   0xd   : > { %1158 = vset.pattern.permute.xlu1 %v1173_v0  ;;  %s347_s15 = scalar_lea.vmem %s1637_s1, %s1134_s11  ;;  %s342_s18 = scalar_lea.vmem %s1636_s0, %s1133_s12  ;;  %v466_v22 = vunpack.c.l.s4 %v1175_v21  ;;  %v362_v41 = vld [vmem:[%s1639_s3] sm:$0x3]  ;;  %v366_v56 = vld [vmem:[%s1640_s4 + $0x8] sm:$0xff]  ;;  %vm733_vm14 = vcmask 293888  }
   0xe   : > { %v397_v1 = vld [vmem:[%s347_s15] sm:$0xff]  ;;  %v398_v3 = vld [vmem:[%s347_s15 + $0x8] sm:$0xff]  ;;  %v428_v47 = vperm.slane %v362_v41, 0  ;;  %v429_v48 = vperm.slane %v362_v41, 1  ;;  %s1183_s15 = smov 17  }
   0xf   : > { %v396_v2 = vld [vmem:[%s342_s18] sm:$0xff]  ;;  %401 = vperm.xlu0 %1156, %v397_v1   ;;  %v1279_v30 = vunpack.c.0.s8 %v466_v22  ;;  %s1178_s18 = smov 15  }
  0x10   : > { %445 = vst [vmem:[#allocation1] ss:$2 sm:$0xff] %v396_v2  ;;  %v365_v55 = vld [vmem:[%s1640_s4] sm:$0xff] }
  0x12   : > { %v1160_v10 = vpop.eup %1159 }
  0x13   : > { %v457_v11 = vmul.f32 256.0, %v1160_v10  ;;  %vm461_vm1 = vweird.f32 %v1160_v10 }
  0x15   : > { %v458_v12 = vsub.f32 1.0, %v457_v11 }
  0x17   : > { %v446_v4 = vld.sshfl [vmem:[#allocation1] sm:$0xff pattern:$0x75316420]  ;;  %v447_v5 = vld.sshfl [vmem:[#allocation1 + $0x8] sm:$0xff pattern:$0x75316420]  ;;  %406 = vperm.xlu0 %1156, %v398_v3   ;;  %v459_v14 = vmul.f32 %v1160_v10, %v458_v12 }
  0x18   : > { %v451_v6 = vsel %vm450_vm0, %v446_v4, 0.0  ;;  %v452_v7 = vsel %vm450_vm0, %v447_v5, 0.0  ;;  %v370_v3 = vld [vmem:[%s1641_s5] sm:$0xff] }
  0x19   : > { %v453_v8 = vadd.f32 %v452_v7, %v451_v6  ;;  %v460_v19 = vadd.f32 %v1160_v10, %v459_v14 }
  0x1b   : > { %454 = vadd.xlane.f32.xlu1 %v453_v8  ;;  %v1277_v29 = vsel %vm461_vm1, %v1160_v10, %v460_v19 }
  0x81   : > { %v1257_v13 = vpop.permute.xlu0 %401 }
  0x82   : > { %v409_v23 = vmul.f32 %v1257_v13, %v353_v15  ;;  %v410_v24 = vmul.f32 %v1257_v13, %v354_v16 }
  0x89   : > { %v1271_v20 = vpop.permute.xlu0 %406 }
  0x8a   : > { %v411_v25 = vmul.f32 %v1271_v20, %v355_v17  ;;  %v412_v26 = vmul.f32 %v1271_v20, %v356_v18  ;;  %v1176_v18 = vmov 1985246804  }
  0x8b   : > { %v518_v19 = vunpack.c.l.s4 %v1176_v18 }
  0x8c   : > { %v413_v27 = vadd.f32 %v411_v25, %v409_v23  ;;  %v420_v28 = vadd.f32 %v412_v26, %v410_v24 }
  0x8d   : > { %v519_v24 = vunpack.c.0.s8 %v518_v19 }
  0x8e   : > { %v455_v31 = vpop.xlane.xlu1 %454  ;;  %v414_v32 = vrot.slane %v413_v27, 4  ;;  %v421_v33 = vrot.slane %v420_v28, 4 }
  0x8f   : > { %v463_v34 = vmul.f32 %v1277_v29, %v455_v31 }
  0x90   : > { %v415_v35 = vadd.f32 %v414_v32, %v413_v27  ;;  %v422_v36 = vadd.f32 %v421_v33, %v420_v28 }
  0x91   : > { %v468_v37 = vperm.slane %v463_v34, %v1279_v30 }
  0x92   : > { %v416_v38 = vrot.slane %v415_v35, 2  ;;  %v423_v39 = vrot.slane %v422_v36, 2 }
  0x93   : > { %v470_v40 = vsub.f32 %v396_v2, %v468_v37 }
  0x94   : > { %v417_v42 = vadd.f32 %v416_v38, %v415_v35  ;;  %v424_v43 = vadd.f32 %v423_v39, %v422_v36 }
  0x95   : > { %v471_v44 = vmul.f32 %v470_v40, %v470_v40 }
  0x96   : > { %v418_v45 = vrot.slane %v417_v42, 1  ;;  %v425_v46 = vrot.slane %v424_v43, 1 }
  0x97   : > { %473 = vst [vmem:[#allocation1] ss:$2 sm:$0xff] %v471_v44 }
  0x98   : > { %v419_v49 = vadd.f32 %v418_v45, %v417_v42  ;;  %v426_v50 = vadd.f32 %v425_v46, %v424_v43  ;;  %v1312_v43 = vld [vmem:[%s1644_s8 + $0x8] sm:$0x3] }
  0x99   : > { %v607_v46 = vperm.slane %v1312_v43, 1 }
  0x9a   : > { %v432_v51 = vadd.f32 %v428_v47, %v419_v49  ;;  %v433_v52 = vadd.f32 %v429_v48, %v426_v50  ;;  %v1107_v47 = vld [vmem:[%s1638_s2 + $0x30] sm:$0xff]  ;;  %v1108_v48 = vld [vmem:[%s1638_s2 + $0x38] sm:$0xff]  ;;  %v1105_v49 = vld [vmem:[%s1638_s2 + $0x20] sm:$0xff] }
  0x9b   : > { %v1106_v50 = vld [vmem:[%s1638_s2 + $0x28] sm:$0xff] }
  0x9c   : > { %v434_v53 = vmax.f32 %v432_v51, 0.0  ;;  %v435_v54 = vmax.f32 %v433_v52, 0.0  ;;  %v606_v51 = vperm.slane %v1312_v43, 0  ;;  %v610_v52 = vrot.slane %v607_v46, 4 }
  0x9e   : > { %v474_v57 = vld.sshfl [vmem:[#allocation1] sm:$0xff pattern:$0x75316420]  ;;  %v475_v58 = vld.sshfl [vmem:[#allocation1 + $0x8] sm:$0xff pattern:$0x75316420] }
  0x9f   : > { %v478_v59 = vsel %vm450_vm0, %v474_v57, 0.0  ;;  %v479_v60 = vsel %vm450_vm0, %v475_v58, 0.0  ;;  %v436_v61 = vperm.slane %v434_v53, 0  ;;  %v437_v62 = vperm.slane %v435_v54, 0 }
  0xa0   : > { %v480_v63 = vadd.f32 %v479_v60, %v478_v59  ;;  %v783_v57 = vmul.f32 %v1105_v49, %v1257_v13  ;;  %v784_v58 = vmul.f32 %v1106_v50, %v1257_v13  ;;  %v611_v59 = vsel %vm450_vm0, %v606_v51, %v610_v52 }
  0xa1   : > { %v438_v0 = vmul.f32 %v436_v61, %v365_v55  ;;  %v439_v1 = vmul.f32 %v437_v62, %v366_v56  ;;  %v785_v55 = vmul.f32 %v1107_v47, %v1271_v20  ;;  %v786_v56 = vmul.f32 %v1108_v48, %v1271_v20 }
  0xa2   : > { %481 = vadd.xlane.f32.xlu2 %v480_v63 }
  0xa3   : > { %v440_v2 = vadd.f32 %v439_v1, %v438_v0  ;;  %v787_v60 = vadd.f32 %v785_v55, %v783_v57  ;;  %v794_v61 = vadd.f32 %v786_v56, %v784_v58 }
  0xa5   : > { %441 = vadd.xlane.f32.xlu1 %v440_v2  ;;  %v788_v20 = vrot.slane %v787_v60, 4  ;;  %v795_v1 = vrot.slane %v794_v61, 4 }
  0xa7   : > { %v789_v13 = vadd.f32 %v788_v20, %v787_v60  ;;  %v796_v2 = vadd.f32 %v795_v1, %v794_v61  ;;  %v1406_v60 = vld [vmem:[%s1644_s8 + $0xc] sm:$0x3]  ;;  %v1412_v61 = vld [vmem:[%s1644_s8 + $0x6] sm:$0x3] }
 0x115   : > { %v482_v7 = vpop.xlane.xlu2 %481 }
 0x116   : > { %v483_v8 = vmul.f32 %v482_v7, %v1277_v29  ;;  %v376_v7 = vld [vmem:[%s1643_s7] sm:$0xf] }
 0x118   : > { %v442_v4 = vpop.xlane.xlu1 %441  ;;  %v484_v9 = vadd.f32 1e-05, %v483_v8 }
 0x119   : > { %v443_v5 = vadd.f32 %v442_v4, %v370_v3  ;;  %v790_v3 = vrot.slane %v789_v13, 2  ;;  %v797_v4 = vrot.slane %v796_v2, 2 }
 0x11a   : > { %1161 = vrsqrt.f32 %v484_v9  ;;  %vm491_vm2 = vweird.f32 %v484_v9 }
 0x11b   : > { %v502_v6 = vadd.f32 1.0, %v443_v5  ;;  %515 = vperm.xlu0 %1156, %v443_v5   ;;  %v791_v5 = vadd.f32 %v790_v3, %v789_v13  ;;  %v647_v3 = vperm.slane %v1406_v60, 1 }
 0x11d   : > { %505 = vperm.xlu2 %1157, %v502_v6   ;;  %v798_v6 = vadd.f32 %v797_v4, %v796_v2  ;;  %v792_v8 = vrot.slane %v791_v5, 1  ;;  %v646_v2 = vperm.slane %v1406_v60, 0  ;;  %v599_v4 = vperm.slane %v1412_v61, 0 }
 0x120   : > { %v1162_v10 = vpop.eup %1161 }
 0x121   : > { %v486_v11 = vmul.f32 %v1162_v10, %v484_v9  ;;  %vm492_vm3 = vweird.f32 %v1162_v10  ;;  %v799_v9 = vrot.slane %v798_v6, 1 }
 0x122   : > { %vm493_vm4 = vmor %vm491_vm2, %vm492_vm3 }
 0x123   : > { %v487_v12 = vmul.f32 %v1162_v10, %v486_v11  ;;  %v793_v11 = vadd.f32 %v792_v8, %v791_v5  ;;  %v600_v5 = vperm.slane %v1412_v61, 1 }
 0x125   : > { %v488_v14 = vmul.f32 0.5, %v487_v12  ;;  %v800_v12 = vadd.f32 %v799_v9, %v798_v6 }
 0x127   : > { %v489_v15 = vsub.f32 1.5, %v488_v14 }
 0x129   : > { %v490_v16 = vmul.f32 %v1162_v10, %v489_v15 }
 0x12b   : > { %v494_v17 = vsel %vm493_vm4, %v1162_v10, %v490_v16  ;;  %v1109_v10 = vld [vmem:[%s1639_s3 + $0x2] sm:$0x3] }
 0x12c   : > { %v499_v22 = vperm.slane %v494_v17, %v1279_v30  ;;  %v802_v14 = vperm.slane %v1109_v10, 0  ;;  %v803_v15 = vperm.slane %v1109_v10, 1 }
 0x12e   : > { %v501_v25 = vmul.f32 %v499_v22, %v470_v40  ;;  %v806_v16 = vadd.f32 %v802_v14, %v793_v11  ;;  %v807_v17 = vadd.f32 %v803_v15, %v800_v12  ;;  %v1438_v11 = vld [vmem:[%s1644_s8] sm:$0x3] }
 0x130   : > { %v808_v18 = vmax.f32 %v806_v16, 0.0  ;;  %v809_v19 = vmax.f32 %v807_v17, 0.0 }
 0x132   : > { %v811_v22 = vperm.slane %v809_v19, 0 }
 0x177   : > { %v506_v21 = vpop.permute.xlu2 %505 }
 0x178   : > { %v510_v23 = vperm.slane %v506_v21, %v1279_v30  ;;  %v810_v21 = vperm.slane %v808_v18, 0 }
 0x17a   : > { %v512_v27 = vmul.f32 %v510_v23, %v501_v25  ;;  %v1110_v23 = vld [vmem:[%s1640_s4 + $0x10] sm:$0xff] }
 0x17b   : > { %v812_v25 = vmul.f32 %v1110_v23, %v810_v21 }
 0x18d   : > { %v516_v26 = vpop.permute.xlu0 %515 }
 0x18e   : > { %v520_v28 = vperm.slane %v516_v26, %v519_v24  ;;  %v1111_v24 = vld [vmem:[%s1640_s4 + $0x18] sm:$0xff] }
 0x18f   : > { %v813_v26 = vmul.f32 %v1111_v24, %v811_v22  ;;  %v1459_v24 = vld [vmem:[%s1644_s8 + $0x4] sm:$0x3] }
 0x190   : > { %v522_v31 = vadd.f32 %v520_v28, %v512_v27 }
 0x191   : > { %v814_v27 = vadd.f32 %v813_v26, %v812_v25 }
 0x192   : > { %vm523_vm5 = vcmp.gt.f32.partialorder %v522_v31, 0.0  ;;  %v524_v32 = vmul.f32 0.2, %v522_v31 }
 0x194   : > { %v525_v33 = vsel %vm523_vm5, %v522_v31, %v524_v32 }
 0x195   : > { %527 = vst [vmem:[#allocation1] ss:$2 sm:$0xff] %v525_v33  ;;  %v613_v62 = vmul.f32 %v611_v59, %v525_v33 }
 0x19c   : > { %v1300_v34 = vld.sshfl [vmem:[#allocation1] sm:$0xff pattern:$0x75316420]  ;;  %v529_v35 = vld.sshfl [vmem:[#allocation1 + $0x8] sm:$0xff pattern:$0x75316420] }
 0x19d   : > { %548 = vst [vmem:[#allocation1] ss:$2 sm:$0xff] %v525_v33 }
 0x1a4   : > { %v550_v36 = vld.sshfl [vmem:[#allocation1 + $0x8] sm:$0xff pattern:$0x75316420]  ;;  %v549_v37 = vld.sshfl [vmem:[#allocation1] sm:$0xff pattern:$0x75316420] }
 0x1a5   : > { %555 = vrot.lane.b32.xlu2 %v550_v36, %s1177_s17  ;;  %553 = vrot.lane.b32.xlu0 %v549_v37, %s1177_s17  ;;  %567 = vst [vmem:[#allocation1] ss:$2 sm:$0xff] %v525_v33 }
 0x1ac   : > { %v569_v30 = vld.sshfl [vmem:[#allocation1 + $0x8] sm:$0xff pattern:$0x75316420]  ;;  %v568_v38 = vld.sshfl [vmem:[#allocation1] sm:$0xff pattern:$0x75316420] }
 0x1ad   : > { %572 = vrot.lane.b32.xlu1 %v568_v38, %s1178_s18  ;;  %586 = vst [vmem:[#allocation1] ss:$2 sm:$0xff] %v525_v33 }
 0x1b4   : > { %v588_v39 = vld.sshfl [vmem:[#allocation1 + $0x8] sm:$0xff pattern:$0x75316420]  ;;  %v587_v40 = vld.sshfl [vmem:[#allocation1] sm:$0xff pattern:$0x75316420] }
 0x1b5   : > { %593 = vrot.lane.b32.xlu1 %v588_v39, %s1179_s19  ;;  %591 = vrot.lane.b32.xlu2 %v587_v40, %s1179_s19  ;;  %614 = vst [vmem:[#allocation1] ss:$2 sm:$0xff] %v525_v33  ;;  %v1370_v40 = vld [vmem:[%s1644_s8 + $0xe] sm:$0x3] }
 0x1b6   : > { %v665_v47 = vperm.slane %v1370_v40, 0  ;;  %v666_v48 = vperm.slane %v1370_v40, 1 }
 0x1bc   : > { %v616_v41 = vld.sshfl [vmem:[#allocation1 + $0x8] sm:$0xff pattern:$0x75316420]  ;;  %v615_v42 = vld.sshfl [vmem:[#allocation1] sm:$0xff pattern:$0x75316420] }
 0x1bd   : > { %621 = vrot.lane.b32.xlu2 %v616_v41, %s1180_s20  ;;  %619 = vrot.lane.b32.xlu0 %v615_v42, %s1180_s20  ;;  %633 = vst [vmem:[#allocation1] ss:$2 sm:$0xff] %v525_v33 }
 0x1c4   : > { %v635_v44 = vld.sshfl [vmem:[#allocation1 + $0x8] sm:$0xff pattern:$0x75316420]  ;;  %v634_v45 = vld.sshfl [vmem:[#allocation1] sm:$0xff pattern:$0x75316420] }
 0x1c5   : > { %640 = vrot.lane.b32.xlu0 %v635_v44, %s1181_s23  ;;  %638 = vrot.lane.b32.xlu1 %v634_v45, %s1181_s23  ;;  %652 = vst [vmem:[#allocation1] ss:$2 sm:$0xff] %v525_v33  ;;  %v1376_v44 = vld [vmem:[%s1644_s8 + $0xa] sm:$0x3]  ;;  %v1381_v45 = vld [vmem:[%s1644_s8 + $0x2] sm:$0x3] }
 0x1c6   : > { %v627_v52 = vperm.slane %v1376_v44, 0  ;;  %v561_v55 = vperm.slane %v1381_v45, 0  ;;  %v562_v56 = vperm.slane %v1381_v45, 1  ;;  %v1113_v45 = vld [vmem:[%s1642_s6 + $0x4] sm:$0xf] }
 0x1cc   : > { %v654_v53 = vld.sshfl [vmem:[#allocation1 + $0x8] sm:$0xff pattern:$0x75316420]  ;;  %v653_v54 = vld.sshfl [vmem:[#allocation1] sm:$0xff pattern:$0x75316420] }
 0x1cd   : > { %659 = vrot.lane.b32.xlu0 %v654_v53, %s1182_s14  ;;  %657 = vrot.lane.b32.xlu1 %v653_v54, %s1182_s14  ;;  %671 = vst [vmem:[#allocation1] ss:$2 sm:$0xff] %v525_v33  ;;  %v628_v53 = vperm.slane %v1376_v44, 1  ;;  %v1395_v54 = vld [vmem:[%s1644_s8 + $0x10] sm:$0x3] }
 0x1ce   : > { %v685_v20 = vperm.slane %v1395_v54, 1 }
 0x1d4   : > { %v673_v63 = vld.sshfl [vmem:[#allocation1 + $0x8] sm:$0xff pattern:$0x75316420]  ;;  %v672_v0 = vld.sshfl [vmem:[#allocation1] sm:$0xff pattern:$0x75316420] }
 0x1d5   : > { %534 = vrot.lane.b32.xlu1 %v529_v35, %s1183_s15  ;;  %678 = vrot.lane.b32.xlu2 %v673_v63, %s1184_s16  ;;  %703 = vst [vmem:[#allocation1] ss:$2 sm:$0xff] %v613_v62 }
 0x1d6   : > { %676 = vrot.lane.b32.xlu0 %v672_v0, %s1184_s16  ;;  %v684_v0 = vperm.slane %v1395_v54, 0 }
 0x1dd   : > { %532 = vrot.lane.b32.xlu2 %v1300_v34, %s1183_s15 }
 0x1de   : > { %574 = vrot.lane.b32.xlu0 %v569_v30, %s1178_s18  ;;  %v536_v30 = vlaneseq }
 0x1e0   : > { %v1365_v39 = vand.u32 127, %v536_v30 }
 0x1e2   : > { %vm661_vm6 = vcmp.lt.s32.totalorder %v1365_v39, 112  ;;  %vm623_vm7 = vcmp.lt.s32.totalorder %v1365_v39, 127  ;;  %vm557_vm8 = vcmp.lt.s32.totalorder %v1365_v39, 16  ;;  %vm642_vm9 = vcmp.lt.s32.totalorder %v1365_v39, 113 }
 0x1e3   : > { %vm595_vm10 = vcmp.lt.s32.totalorder %v1365_v39, 1  ;;  %vm680_vm11 = vcmp.lt.s32.totalorder %v1365_v39, 111  ;;  %vm538_vm12 = vcmp.lt.s32.totalorder %v1365_v39, 17  ;;  %vm576_vm13 = vcmp.lt.s32.totalorder %v1365_v39, 15 }
 0x1e6   : > { %730 = vperm.xlu0 %1156, %v376_v7  }
 0x1ff   : > { %815 = vadd.xlane.f32.xlu1 %v814_v27  ;;  %v1363_v32 = vpop.permute.xlu2 %555  ;;  %v542_v27 = vperm.slane %v1438_v11, 0 }
 0x20f   : > { %v592_v35 = vpop.permute.xlu2 %591 }
 0x217   : > { %v1361_v31 = vpop.permute.xlu0 %553  ;;  %v622_v38 = vpop.permute.xlu2 %621 }
 0x218   : > { %v558_v25 = vsel %vm557_vm8, %v1361_v31, %v1363_v32  ;;  %v559_v26 = vsel %vm557_vm8, %v1363_v32, %v1361_v31  ;;  %v704_v31 = vld.sshfl [vmem:[#allocation1] sm:$0xff pattern:$0x75316420]  ;;  %v705_v32 = vld.sshfl [vmem:[#allocation1 + $0x8] sm:$0xff pattern:$0x75316420] }
 0x21f   : > { %v1359_v28 = vpop.permute.xlu1 %572 }
 0x227   : > { %v594_v33 = vpop.permute.xlu1 %593 }
 0x228   : > { %v596_v15 = vsel %vm595_vm10, %v592_v35, %v594_v33  ;;  %v597_v16 = vsel %vm595_vm10, %v594_v33, %v592_v35 }
 0x229   : > { %v604_v35 = vmul.f32 %v600_v5, %v596_v15 }
 0x22f   : > { %v620_v34 = vpop.permute.xlu0 %619  ;;  %v679_v59 = vpop.permute.xlu2 %678 }
 0x230   : > { %v624_v57 = vsel %vm623_vm7, %v620_v34, %v622_v38  ;;  %v625_v58 = vsel %vm623_vm7, %v622_v38, %v620_v34  ;;  %v603_v34 = vmul.f32 %v599_v4, %v597_v16  ;;  %v543_v38 = vperm.slane %v1438_v11, 1 }
 0x231   : > { %v631_v1 = vmul.f32 %v627_v52, %v624_v57  ;;  %v632_v13 = vmul.f32 %v628_v53, %v625_v58 }
 0x233   : > { %v710_v19 = vrot.slane %v631_v1, 4  ;;  %v711_v21 = vrot.slane %v632_v13, 4  ;;  %v698_v1 = vrot.slane %v603_v34, 4  ;;  %v699_v13 = vrot.slane %v604_v35, 4 }
 0x235   : > { %v724_v57 = vsel %vm450_vm0, %v704_v31, %v710_v19  ;;  %v725_v58 = vsel %vm450_vm0, %v705_v32, %v711_v21  ;;  %v1112_v21 = vld [vmem:[%s1641_s5 + $0x8] sm:$0xff] }
 0x237   : > { %v641_v36 = vpop.permute.xlu0 %640  ;;  %v639_v37 = vpop.permute.xlu1 %638 }
 0x238   : > { %v643_v6 = vsel %vm642_vm9, %v639_v37, %v641_v36  ;;  %v644_v7 = vsel %vm642_vm9, %v641_v36, %v639_v37  ;;  %v533_v30 = vpop.permute.xlu2 %532 }
 0x239   : > { %v650_v22 = vmul.f32 %v646_v2, %v643_v6  ;;  %v651_v23 = vmul.f32 %v647_v3, %v644_v7 }
 0x23f   : > { %v660_v41 = vpop.permute.xlu0 %659  ;;  %v658_v42 = vpop.permute.xlu1 %657 }
 0x240   : > { %v662_v49 = vsel %vm661_vm6, %v658_v42, %v660_v41  ;;  %v663_v50 = vsel %vm661_vm6, %v660_v41, %v658_v42  ;;  %v580_v41 = vperm.slane %v1459_v24, 0  ;;  %v581_v42 = vperm.slane %v1459_v24, 1 }
 0x241   : > { %v669_v62 = vmul.f32 %v665_v47, %v662_v49  ;;  %v670_v63 = vmul.f32 %v666_v48, %v663_v50 }
 0x243   : > { %v716_v9 = vrot.slane %v669_v62, 4  ;;  %v717_v10 = vrot.slane %v670_v63, 4  ;;  %v566_v62 = vmul.f32 %v562_v56, %v558_v25 }
 0x245   : > { %v726_v36 = vsel %vm450_vm0, %v650_v22, %v716_v9  ;;  %v727_v37 = vsel %vm450_vm0, %v651_v23, %v717_v10  ;;  %v693_v15 = vrot.slane %v566_v62, 4 }
 0x247   : > { %v535_v33 = vpop.permute.xlu1 %534 }
 0x248   : > { %v677_v8 = vpop.permute.xlu0 %676  ;;  %v539_v49 = vsel %vm538_vm12, %v533_v30, %v535_v33  ;;  %v540_v50 = vsel %vm538_vm12, %v535_v33, %v533_v30 }
 0x249   : > { %v681_v12 = vsel %vm680_vm11, %v677_v8, %v679_v59  ;;  %v682_v14 = vsel %vm680_vm11, %v679_v59, %v677_v8  ;;  %v565_v59 = vmul.f32 %v561_v55, %v559_v26  ;;  %v546_v8 = vmul.f32 %v542_v27, %v540_v50 }
 0x24a   : > { %v688_v17 = vmul.f32 %v684_v0, %v681_v12  ;;  %v689_v18 = vmul.f32 %v685_v20, %v682_v14  ;;  %v547_v9 = vmul.f32 %v543_v38, %v539_v49 }
 0x24b   : > { %v692_v14 = vrot.slane %v565_v59, 4 }
 0x24c   : > { %1123 = vmatpush.msk.msra.mxu0 %vm450_vm0, %v688_v17  ;;  %1125 = vmatpush.msk.msra.mxu1 %vm450_vm0, %v689_v18  ;;  %v721_v19 = vsel %vm450_vm0, %v547_v9, %v693_v15 }
 0x24d   : > { %v720_v18 = vsel %vm450_vm0, %v546_v8, %v692_v14 }
 0x24e   : > { %755 = vmatpush.msra.mxu0 %v726_v36  ;;  %775 = vmatpush.msra.mxu1 %v727_v37 }
 0x250   : > { %v575_v63 = vpop.permute.xlu0 %574  ;;  %756 = vmatpush.msra.mxu0 %v724_v57  ;;  %776 = vmatpush.msra.mxu1 %v725_v58 }
 0x251   : > { %v577_v6 = vsel %vm576_vm13, %v1359_v28, %v575_v63  ;;  %v578_v7 = vsel %vm576_vm13, %v575_v63, %v1359_v28  ;;  %v373_v28 = vld [vmem:[%s1642_s6] sm:$0xf] }
 0x252   : > { %v584_v10 = vmul.f32 %v580_v41, %v578_v7  ;;  %v585_v12 = vmul.f32 %v581_v42, %v577_v6 }
 0x254   : > { %v722_v16 = vsel %vm450_vm0, %v584_v10, %v698_v1  ;;  %v723_v17 = vsel %vm450_vm0, %v585_v12, %v699_v13 }
 0x255   : > { %757 = vmatpush.msra.mxu0 %v722_v16  ;;  %777 = vmatpush.msra.mxu1 %v723_v17 }
 0x257   : > { %758 = vmatpush.msra.mxu0 %v720_v18  ;;  %778 = vmatpush.msra.mxu1 %v721_v19 }
 0x258   : > { %1124 = vmatmul.msk.f32.vlgmr.msra.gmra.mxu0 %vm733_vm14, %v373_v28  ;;  %1126 = vmatmul.msk.f32.vlgmr.msra.gmra.mxu1 %vm733_vm14, %v373_v28  ;;  %v731_v25 = vpop.permute.xlu0 %730 }
 0x272   : > { %v816_v22 = vpop.xlane.xlu1 %815 }
 0x273   : > { %v817_v23 = vadd.f32 %v1112_v21, %v816_v22 }
 0x275   : > { %857 = vperm.xlu1 %1158, %v817_v23   ;;  %v847_v32 = vadd.f32 1.0, %v817_v23 }
 0x2d5   : > { %v760_v26 = vpop.f32.mrf.mxu0  ;;  %v780_v33 = vpop.f32.mrf.mxu1 }
 0x2d6   : > { %v761_v34 = vadd.f32 %v760_v26, %v731_v25  ;;  %v781_v35 = vadd.f32 %v780_v33, %v731_v25 }
 0x2d8   : > { %v818_v36 = vsel %vm450_vm0, %v761_v34, 0.0  ;;  %v819_v37 = vsel %vm450_vm0, %v781_v35, 0.0 }
 0x2d9   : > { %v820_v31 = vadd.f32 %v819_v37, %v818_v36  ;;  %v1114_v36 = vld [vmem:[%s1643_s7 + $0x4] sm:$0xf] }
 0x2db   : > { %821 = vadd.xlane.f32.xlu2 %v820_v31 }
 0x2e7   : > { %v858_v16 = vpop.permute.xlu1 %857 }
 0x2e8   : > { %v859_v21 = vrot.slane %v858_v16, 4 }
 0x2f3   : > { %850 = vperm.xlu2 %1157, %v847_v32  }
 0x34e   : > { %v822_v30 = vpop.xlane.xlu2 %821 }
 0x34f   : > { %v823_v49 = vmul.f32 %v822_v30, %v1277_v29 }
 0x351   : > { %v824_v50 = vsub.f32 %v761_v34, %v823_v49  ;;  %v825_v57 = vsub.f32 %v781_v35, %v823_v49 }
 0x353   : > { %v826_v58 = vmul.f32 %v824_v50, %v824_v50  ;;  %v827_v59 = vmul.f32 %v825_v57, %v825_v57 }
 0x355   : > { %v828_v62 = vsel %vm450_vm0, %v826_v58, 0.0  ;;  %v829_v63 = vsel %vm450_vm0, %v827_v59, 0.0 }
 0x356   : > { %v830_v1 = vadd.f32 %v829_v63, %v828_v62  ;;  %v851_v19 = vpop.permute.xlu2 %850 }
 0x358   : > { %831 = vadd.xlane.f32.xlu0 %v830_v1 }
 0x3cb   : > { %v832_v13 = vpop.xlane.xlu0 %831 }
 0x3cc   : > { %v833_v6 = vmul.f32 %v832_v13, %v1277_v29 }
 0x3ce   : > { %v834_v7 = vadd.f32 1e-05, %v833_v6 }
 0x3d0   : > { %1163 = vrsqrt.f32 %v834_v7  ;;  %vm841_vm1 = vweird.f32 %v834_v7 }
 0x3d6   : > { %v1164_v8 = vpop.eup %1163 }
 0x3d7   : > { %v836_v9 = vmul.f32 %v1164_v8, %v834_v7  ;;  %vm842_vm15 = vweird.f32 %v1164_v8 }
 0x3d8   : > { %vm843_vm2 = vmor %vm841_vm1, %vm842_vm15 }
 0x3d9   : > { %v837_v10 = vmul.f32 %v1164_v8, %v836_v9 }
 0x3db   : > { %v838_v12 = vmul.f32 0.5, %v837_v10 }
 0x3dd   : > { %v839_v14 = vsub.f32 1.5, %v838_v12 }
 0x3df   : > { %v840_v15 = vmul.f32 %v1164_v8, %v839_v14 }
 0x3e1   : > { %v844_v17 = vsel %vm843_vm2, %v1164_v8, %v840_v15 }
 0x3e2   : > { %v845_v28 = vmul.f32 %v844_v17, %v824_v50  ;;  %v846_v18 = vmul.f32 %v844_v17, %v825_v57 }
 0x3e4   : > { %v853_v22 = vmul.f32 %v851_v19, %v845_v28  ;;  %v854_v23 = vmul.f32 %v851_v19, %v846_v18 }
 0x3e6   : > { %v861_v29 = vadd.f32 %v859_v21, %v853_v22  ;;  %v862_v25 = vadd.f32 %v859_v21, %v854_v23 }
 0x3e8   : > { %vm863_vm3 = vcmp.gt.f32.partialorder %v861_v29, 0.0  ;;  %vm864_vm4 = vcmp.gt.f32.partialorder %v862_v25, 0.0  ;;  %v865_v26 = vmul.f32 0.2, %v861_v29  ;;  %v866_v33 = vmul.f32 0.2, %v862_v25 }
 0x3ea   : > { %v867_v34 = vsel %vm863_vm3, %v861_v29, %v865_v26  ;;  %v868_v35 = vsel %vm864_vm4, %v862_v25, %v866_v33 }
 0x3eb   : > { %921 = vrot.lane.b32.xlu2 %v868_v35, %s1182_s14  ;;  %927 = vrot.lane.b32.xlu1 %v867_v34, %s1184_s16  ;;  %v901_v17 = vmul.f32 %v867_v34, %v606_v51  ;;  %v902_v28 = vmul.f32 %v868_v35, %v607_v46 }
 0x3ec   : > { %919 = vrot.lane.b32.xlu0 %v867_v34, %s1182_s14 }
 0x3f3   : > { %903 = vrot.lane.b32.xlu2 %v867_v34, %s1180_s20  ;;  %905 = vrot.lane.b32.xlu1 %v868_v35, %s1180_s20 }
 0x3f4   : > { %929 = vrot.lane.b32.xlu0 %v868_v35, %s1184_s16 }
 0x3fb   : > { %913 = vrot.lane.b32.xlu2 %v868_v35, %s1181_s23  ;;  %893 = vrot.lane.b32.xlu1 %v867_v34, %s1179_s19 }
 0x3fc   : > { %911 = vrot.lane.b32.xlu0 %v867_v34, %s1181_s23 }
 0x403   : > { %877 = vrot.lane.b32.xlu2 %v867_v34, %s1177_s17  ;;  %879 = vrot.lane.b32.xlu1 %v868_v35, %s1177_s17 }
 0x404   : > { %895 = vrot.lane.b32.xlu0 %v868_v35, %s1179_s19 }
 0x40b   : > { %887 = vrot.lane.b32.xlu2 %v868_v35, %s1178_s18  ;;  %869 = vrot.lane.b32.xlu1 %v867_v34, %s1183_s15 }
 0x40c   : > { %885 = vrot.lane.b32.xlu0 %v867_v34, %s1178_s18 }
 0x413   : > { %969 = vperm.xlu2 %1157, %v1114_v36  }
 0x414   : > { %871 = vrot.lane.b32.xlu0 %v868_v35, %s1183_s15  ;;  %s352_s15 = scalar_lea.vmem %s1645_s9, %s1133_s12 }
 0x445   : > { %v922_v37 = vpop.permute.xlu2 %921 }
 0x44d   : > { %v904_v30 = vpop.permute.xlu2 %903 }
 0x455   : > { %v914_v7 = vpop.permute.xlu2 %913 }
 0x45d   : > { %v928_v31 = vpop.permute.xlu1 %927  ;;  %v878_v18 = vpop.permute.xlu2 %877 }
 0x45e   : > { %v920_v32 = vpop.permute.xlu0 %919 }
 0x45f   : > { %v923_v59 = vsel %vm661_vm6, %v920_v32, %v922_v37  ;;  %v924_v62 = vsel %vm661_vm6, %v922_v37, %v920_v32 }
 0x460   : > { %v925_v8 = vmul.f32 %v923_v59, %v665_v47 }
 0x462   : > { %v955_v10 = vrot.slane %v925_v8, 4 }
 0x465   : > { %v906_v49 = vpop.permute.xlu1 %905  ;;  %v888_v22 = vpop.permute.xlu2 %887 }
 0x466   : > { %v930_v50 = vpop.permute.xlu0 %929  ;;  %v907_v13 = vsel %vm623_vm7, %v904_v30, %v906_v49  ;;  %v908_v6 = vsel %vm623_vm7, %v906_v49, %v904_v30 }
 0x467   : > { %v931_v57 = vsel %vm680_vm11, %v928_v31, %v930_v50  ;;  %v932_v58 = vsel %vm680_vm11, %v930_v50, %v928_v31  ;;  %v909_v54 = vmul.f32 %v907_v13, %v627_v52 }
 0x468   : > { %v933_v63 = vmul.f32 %v931_v57, %v684_v0  ;;  %v934_v1 = vmul.f32 %v932_v58, %v685_v20  ;;  %v926_v0 = vmul.f32 %v924_v62, %v666_v48  ;;  %v910_v20 = vmul.f32 %v908_v6, %v628_v53 }
 0x469   : > { %v949_v16 = vrot.slane %v909_v54, 4 }
 0x46a   : > { %1127 = vmatpush.msk.msra.mxu2 %vm450_vm0, %v933_v63  ;;  %1129 = vmatpush.msk.msra.mxu3 %vm450_vm0, %v934_v1  ;;  %v956_v12 = vrot.slane %v926_v0, 4  ;;  %v950_v47 = vrot.slane %v910_v20, 4 }
 0x46b   : > { %v963_v19 = vsel %vm450_vm0, %v901_v17, %v949_v16 }
 0x46d   : > { %v894_v52 = vpop.permute.xlu1 %893  ;;  %v970_v39 = vpop.permute.xlu2 %969 }
 0x46e   : > { %v912_v9 = vpop.permute.xlu0 %911 }
 0x46f   : > { %v915_v14 = vsel %vm642_vm9, %v912_v9, %v914_v7  ;;  %v916_v15 = vsel %vm642_vm9, %v914_v7, %v912_v9 }
 0x470   : > { %v917_v40 = vmul.f32 %v915_v14, %v646_v2  ;;  %v918_v48 = vmul.f32 %v916_v15, %v647_v3  ;;  %v964_v2 = vsel %vm450_vm0, %v902_v28, %v950_v47 }
 0x472   : > { %v965_v44 = vsel %vm450_vm0, %v917_v40, %v955_v10  ;;  %v966_v53 = vsel %vm450_vm0, %v918_v48, %v956_v12 }
 0x473   : > { %993 = vmatpush.msra.mxu2 %v965_v44  ;;  %1013 = vmatpush.msra.mxu3 %v966_v53 }
 0x475   : > { %994 = vmatpush.msra.mxu2 %v963_v19  ;;  %1014 = vmatpush.msra.mxu3 %v964_v2  ;;  %v880_v51 = vpop.permute.xlu1 %879 }
 0x476   : > { %v896_v60 = vpop.permute.xlu0 %895  ;;  %v881_v61 = vsel %vm557_vm8, %v878_v18, %v880_v51 }
 0x477   : > { %v897_v3 = vsel %vm595_vm10, %v894_v52, %v896_v60  ;;  %v898_v21 = vsel %vm595_vm10, %v896_v60, %v894_v52 }
 0x478   : > { %v899_v43 = vmul.f32 %v898_v21, %v599_v4  ;;  %v900_v46 = vmul.f32 %v897_v3, %v600_v5  ;;  %v882_v4 = vsel %vm557_vm8, %v880_v51, %v878_v18 }
 0x479   : > { %v883_v37 = vmul.f32 %v882_v4, %v561_v55 }
 0x47a   : > { %v943_v26 = vrot.slane %v899_v43, 4  ;;  %v944_v33 = vrot.slane %v900_v46, 4 }
 0x47b   : > { %v937_v30 = vrot.slane %v883_v37, 4 }
 0x47d   : > { %v870_v24 = vpop.permute.xlu1 %869 }
 0x47e   : > { %v886_v23 = vpop.permute.xlu0 %885 }
 0x47f   : > { %v889_v29 = vsel %vm576_vm13, %v886_v23, %v888_v22  ;;  %v890_v25 = vsel %vm576_vm13, %v888_v22, %v886_v23 }
 0x480   : > { %v891_v34 = vmul.f32 %v890_v25, %v580_v41  ;;  %v892_v35 = vmul.f32 %v889_v29, %v581_v42  ;;  %v884_v41 = vmul.f32 %v881_v61, %v562_v56 }
 0x482   : > { %v961_v5 = vsel %vm450_vm0, %v891_v34, %v943_v26  ;;  %v962_v36 = vsel %vm450_vm0, %v892_v35, %v944_v33  ;;  %v938_v49 = vrot.slane %v884_v41, 4 }
 0x483   : > { %995 = vmatpush.msra.mxu2 %v961_v5  ;;  %1015 = vmatpush.msra.mxu3 %v962_v36 }
 0x486   : > { %v872_v42 = vpop.permute.xlu0 %871 }
 0x487   : > { %v873_v31 = vsel %vm538_vm12, %v870_v24, %v872_v42  ;;  %v874_v32 = vsel %vm538_vm12, %v872_v42, %v870_v24 }
 0x488   : > { %v875_v50 = vmul.f32 %v874_v32, %v542_v27  ;;  %v876_v55 = vmul.f32 %v873_v31, %v543_v38 }
 0x48a   : > { %v959_v56 = vsel %vm450_vm0, %v875_v50, %v937_v30  ;;  %v960_v57 = vsel %vm450_vm0, %v876_v55, %v938_v49 }
 0x48b   : > { %996 = vmatpush.msra.mxu2 %v959_v56  ;;  %1016 = vmatpush.msra.mxu3 %v960_v57 }
 0x48c   : > { %1128 = vmatmul.msk.f32.vlgmr.msra.gmra.mxu2 %vm733_vm14, %v1113_v45  ;;  %1130 = vmatmul.msk.f32.vlgmr.msra.gmra.mxu3 %vm733_vm14, %v1113_v45 }
 0x50f   : > { %v998_v58 = vpop.f32.mrf.mxu2  ;;  %v1018_v27 = vpop.f32.mrf.mxu3 }
 0x510   : > { %v1019_v59 = vadd.f32 %v1018_v27, %v970_v39  ;;  %v999_v11 = vadd.f32 %v998_v58, %v970_v39 }
 0x512   : > { %v1023_v38 = vrot.slane %v1019_v59, 4 }
 0x514   : > { %v1024_v62 = vsel %vm450_vm0, %v999_v11, %v1023_v38 }
 0x515   : > { %1026 = vst [vmem:[%s352_s15] sm:$0xff] %v1024_v62 }
 0x516 PF: > { %s19_s30 = sadd.s32 1, %s1171_s30  }
 0x517   : > { %p16_p4 = scmp.ge.s32.totalorder %s19_s30, 4  }
 0x519   :  { %18 = sbr.rel (!%p16_p4) target bundleno = 1 (0x1), region = 103 }

</bundles_post_ra>
